<compile_context>
chip_gen: v7x
topology: tpu7x:2x2x1
jax: 0.10.0
libtpu: 0.0.40
codegen_flags: <defaults>
</compile_context>

<pallas_src>
import functools

import jax
import jax.numpy as jnp
from jax.experimental import pallas as pl
from jax.experimental.pallas import tpu as pltpu


# ---------------------------------------------------------------------------
# Pass 1: fused global sum + max pooling over the spatial (lane) axis.
# ---------------------------------------------------------------------------
def _pool_kernel(x_ref, sum_ref, max_ref, *, s_true, s_tile, needs_mask):
    # x_ref: (B, C, TS); sum_ref / max_ref: (B, C) resident accumulators.
    k = pl.program_id(0)

    # Single load of the tile feeds BOTH reductions (one sweep through vld).
    x = x_ref[...].astype(jnp.float32)

    if needs_mask:
        # Padded lanes (global index >= true S) must not win the max.
        lane = jax.lax.broadcasted_iota(jnp.int32, x.shape, 2) + k * s_tile
        x_for_max = jnp.where(lane < s_true, x, -jnp.inf)
    else:
        x_for_max = x

    part_sum = jnp.sum(x, axis=-1)          # (B, C)
    part_max = jnp.max(x_for_max, axis=-1)  # (B, C)

    @pl.when(k == 0)
    def _():
        sum_ref[...] = part_sum
        max_ref[...] = part_max

    @pl.when(k != 0)
    def _():
        sum_ref[...] = sum_ref[...] + part_sum
        max_ref[...] = jnp.maximum(max_ref[...], part_max)


# ---------------------------------------------------------------------------
# Pass 2: broadcast the per-(batch, channel) gate over the spatial axis.
# ---------------------------------------------------------------------------
def _apply_kernel(x_ref, scale_ref, o_ref):
    # x_ref: (1, C, TS), scale_ref: (1, C, 1) -> lane broadcast multiply.
    o_ref[...] = x_ref[...] * scale_ref[...]


# ---------------------------------------------------------------------------
# Wrapper
# ---------------------------------------------------------------------------
def channel_gate(x, w1, b1, w2, b2, *, s_tile=512):
    """x: (B, C, D, H, W) float32 -> (B, C, D, H, W) float32."""
    B, C, D, H, W = x.shape
    S = D * H * W
    x3 = x.reshape(B, C, S)

    # Pad S up to a multiple of the lane tile (tile itself a multiple of 128).
    LANE = 128
    s128 = -(-S // LANE) * LANE
    ts = min(s_tile, s128)
    s_pad = -(-s128 // ts) * ts
    if s_pad != S:
        x3 = jnp.pad(x3, ((0, 0), (0, 0), (0, s_pad - S)))
    num_s_tiles = s_pad // ts

    # ---- Pass 1: tiled, pipelined pooling (sum + max in one traversal) ----
    sum_pool, max_pool = pl.pallas_call(
        functools.partial(
            _pool_kernel, s_true=S, s_tile=ts, needs_mask=(s_pad != S)
        ),
        out_shape=(
            jax.ShapeDtypeStruct((B, C), jnp.float32),
            jax.ShapeDtypeStruct((B, C), jnp.float32),
        ),
        grid=(num_s_tiles,),
        in_specs=[pl.BlockSpec((B, C, ts), lambda k: (0, 0, k))],
        out_specs=(
            pl.BlockSpec((B, C), lambda k: (0, 0)),
            pl.BlockSpec((B, C), lambda k: (0, 0)),
        ),
        compiler_params=pltpu.CompilerParams(
            dimension_semantics=("arbitrary",)
        ),
    )(x3)

    avg_pool = sum_pool * (1.0 / S)  # finalize mean with a single multiply

    # ---- Tiny MLP (32 -> 2 -> 32) + sigmoid: negligible, plain JAX ----
    # Keeps the padded 2-wide matmuls off the Pallas kernels' critical path.
    def mlp(p):
        h = jnp.maximum(p @ w1 + b1, 0.0)
        return h @ w2 + b2

    scale = jax.nn.sigmoid(mlp(avg_pool) + mlp(max_pool))      # (B, C)
    scale3 = scale.reshape(B, C, 1).astype(x.dtype)

    # ---- Pass 2: tiled, pipelined elementwise gating ----
    out3 = pl.pallas_call(
        _apply_kernel,
        out_shape=jax.ShapeDtypeStruct((B, C, s_pad), x.dtype),
        grid=(B, num_s_tiles),
        in_specs=[
            pl.BlockSpec((1, C, ts), lambda b, k: (b, 0, k)),
            pl.BlockSpec((1, C, 1), lambda b, k: (b, 0, 0)),
        ],
        out_specs=pl.BlockSpec((1, C, ts), lambda b, k: (b, 0, k)),
        compiler_params=pltpu.CompilerParams(
            dimension_semantics=("parallel", "parallel")
        ),
    )(x3, scale3)

    return out3[:, :, :S].reshape(B, C, D, H, W)


# ---------------------------------------------------------------------------
# Pure-JAX reference mirroring the PyTorch forward.
# ---------------------------------------------------------------------------
def channel_gate_reference(x, w1, b1, w2, b2):
    avg_pool = jnp.mean(x, axis=(2, 3, 4))           # (B, C)
    max_pool = jnp.max(x, axis=(2, 3, 4))            # (B, C)

    def mlp(p):
        h = jnp.maximum(p @ w1 + b1, 0.0)
        return h @ w2 + b2

    att = mlp(avg_pool) + mlp(max_pool)
    scale = jax.nn.sigmoid(att)[:, :, None, None, None]
    return x * scale


if __name__ == "__main__":
    # ChannelGate hyper-parameters (consistent with the module defaults).
    gate_channels = 32
    reduction_ratio = 16
    hidden = gate_channels // reduction_ratio        # = 2

    B, C, D, H, W = 2, gate_channels, 4, 8, 8        # S = 256 (multiple of 128)

    key = jax.random.PRNGKey(0)
    kx, kw1, kb1, kw2, kb2 = jax.random.split(key, 5)

    x = jax.random.normal(kx, (B, C, D, H, W), dtype=jnp.float32)

    # PyTorch Linear stores (out, in); we keep the transposed (in, out) layout
    # so the MLP can do p @ W directly.
    lim1 = 1.0 / jnp.sqrt(gate_channels)
    lim2 = 1.0 / jnp.sqrt(hidden)
    w1 = jax.random.uniform(kw1, (gate_channels, hidden), jnp.float32, -lim1, lim1)
    b1 = jax.random.uniform(kb1, (1, hidden), jnp.float32, -lim1, lim1)
    w2 = jax.random.uniform(kw2, (hidden, gate_channels), jnp.float32, -lim2, lim2)
    b2 = jax.random.uniform(kb2, (1, gate_channels), jnp.float32, -lim2, lim2)

    fn = jax.jit(channel_gate)
    out = jax.block_until_ready(fn(x, w1, b1, w2, b2))

    ref = channel_gate_reference(x, w1, b1, w2, b2)
    assert out.shape == x.shape
    assert jnp.allclose(out, ref, atol=1e-5, rtol=1e-5), "mismatch vs reference"

    print("KERNEL_OK")
</pallas_src>

<mosaic_0001>
module attributes {stable_mosaic.version = 11 : i64} {
  func.func @_pool_kernel(%arg0: i32, %arg1: memref<2x32x256xf32, #tpu.memory_space<vmem>>, %arg2: memref<2x32xf32, #tpu.memory_space<vmem>>, %arg3: memref<2x32xf32, #tpu.memory_space<vmem>>) attributes {dimension_semantics = [#tpu.dimension_semantics<arbitrary>], iteration_bounds = array<i64: 1>, scalar_prefetch = 0 : i64, scratch_operands = 0 : i64, tpu.core_type = #tpu.core_type<tc>, window_params = [{transform_indices = @transform_0, window_bounds = array<i64: 2, 32, 256>}, {pipeline_mode = #tpu.pipeline_mode<synchronous>, transform_indices = @transform_1, window_bounds = array<i64: 2, 32>}, {pipeline_mode = #tpu.pipeline_mode<synchronous>, transform_indices = @transform_2, window_bounds = array<i64: 2, 32>}]} {
    %c0 = arith.constant 0 : index
    %c0_0 = arith.constant 0 : index
    %c0_1 = arith.constant 0 : index
    %0 = vector.load %arg1[%c0, %c0_0, %c0_1] : memref<2x32x256xf32, #tpu.memory_space<vmem>>, vector<2x32x256xf32>
    %cst = arith.constant dense<0.000000e+00> : vector<2x32xf32>
    %1 = vector.multi_reduction <add>, %0, %cst [2] : vector<2x32x256xf32> to vector<2x32xf32>
    %cst_2 = arith.constant dense<0xFF800000> : vector<2x32xf32>
    %2 = vector.multi_reduction <maximumf>, %0, %cst_2 [2] : vector<2x32x256xf32> to vector<2x32xf32>
    %c0_i32 = arith.constant 0 : i32
    %3 = arith.cmpi eq, %arg0, %c0_i32 : i32
    %4 = arith.extui %3 : i1 to i32
    %c0_i32_3 = arith.constant 0 : i32
    %5 = arith.cmpi ne, %4, %c0_i32_3 : i32
    scf.if %5 {
      %c0_6 = arith.constant 0 : index
      %c0_7 = arith.constant 0 : index
      %9 = vector.load %arg2[%c0_6, %c0_7] : memref<2x32xf32, #tpu.memory_space<vmem>>, vector<2x32xf32>
      tpu.vector_store %arg2[%c0_6, %c0_7], %1 {strides = array<i32>} : memref<2x32xf32, #tpu.memory_space<vmem>>, vector<2x32xf32>,
      %c0_8 = arith.constant 0 : index
      %c0_9 = arith.constant 0 : index
      %10 = vector.load %arg3[%c0_8, %c0_9] : memref<2x32xf32, #tpu.memory_space<vmem>>, vector<2x32xf32>
      tpu.vector_store %arg3[%c0_8, %c0_9], %2 {strides = array<i32>} : memref<2x32xf32, #tpu.memory_space<vmem>>, vector<2x32xf32>,
    } else {
    }
    %c0_i32_4 = arith.constant 0 : i32
    %6 = arith.cmpi ne, %arg0, %c0_i32_4 : i32
    %7 = arith.extui %6 : i1 to i32
    %c0_i32_5 = arith.constant 0 : i32
    %8 = arith.cmpi ne, %7, %c0_i32_5 : i32
    scf.if %8 {
      %c0_6 = arith.constant 0 : index
      %c0_7 = arith.constant 0 : index
      %9 = vector.load %arg2[%c0_6, %c0_7] : memref<2x32xf32, #tpu.memory_space<vmem>>, vector<2x32xf32>
      %10 = arith.addf %9, %1 : vector<2x32xf32>
      %c0_8 = arith.constant 0 : index
      %c0_9 = arith.constant 0 : index
      %11 = vector.load %arg2[%c0_8, %c0_9] : memref<2x32xf32, #tpu.memory_space<vmem>>, vector<2x32xf32>
      tpu.vector_store %arg2[%c0_8, %c0_9], %10 {strides = array<i32>} : memref<2x32xf32, #tpu.memory_space<vmem>>, vector<2x32xf32>,
      %c0_10 = arith.constant 0 : index
      %c0_11 = arith.constant 0 : index
      %12 = vector.load %arg3[%c0_10, %c0_11] : memref<2x32xf32, #tpu.memory_space<vmem>>, vector<2x32xf32>
      %13 = arith.maximumf %12, %2 : vector<2x32xf32>
      %c0_12 = arith.constant 0 : index
      %c0_13 = arith.constant 0 : index
      %14 = vector.load %arg3[%c0_12, %c0_13] : memref<2x32xf32, #tpu.memory_space<vmem>>, vector<2x32xf32>
      tpu.vector_store %arg3[%c0_12, %c0_13], %13 {strides = array<i32>} : memref<2x32xf32, #tpu.memory_space<vmem>>, vector<2x32xf32>,
    } else {
    }
    return
  }
  func.func @transform_0(%arg0: i32) -> (i32, i32, i32) {
    %c0_i32 = arith.constant 0 : i32
    %c0_i32_0 = arith.constant 0 : i32
    %c0_i32_1 = arith.constant 0 : i32
    return %c0_i32, %c0_i32_0, %arg0 : i32, i32, i32
  }
  func.func @transform_1(%arg0: i32) -> (i32, i32) {
    %c0_i32 = arith.constant 0 : i32
    %c0_i32_0 = arith.constant 0 : i32
    %c0_i32_1 = arith.constant 0 : i32
    return %c0_i32, %c0_i32_0 : i32, i32
  }
  func.func @transform_2(%arg0: i32) -> (i32, i32) {
    %c0_i32 = arith.constant 0 : i32
    %c0_i32_0 = arith.constant 0 : i32
    %c0_i32_1 = arith.constant 0 : i32
    return %c0_i32, %c0_i32_0 : i32, i32
  }
}

module attributes {stable_mosaic.version = 11 : i64} {
  func.func @_apply_kernel(%arg0: i32, %arg1: i32, %arg2: memref<1x32x256xf32, #tpu.memory_space<vmem>>, %arg3: memref<1x32x1xf32, #tpu.memory_space<vmem>>, %arg4: memref<1x32x256xf32, #tpu.memory_space<vmem>>) attributes {dimension_semantics = [#tpu.dimension_semantics<parallel>, #tpu.dimension_semantics<parallel>], iteration_bounds = array<i64: 2, 1>, scalar_prefetch = 0 : i64, scratch_operands = 0 : i64, tpu.core_type = #tpu.core_type<tc>, window_params = [{transform_indices = @transform_0, window_bounds = array<i64: 1, 32, 256>}, {transform_indices = @transform_1, window_bounds = array<i64: 1, 32, 1>}, {transform_indices = @transform_2, window_bounds = array<i64: 1, 32, 256>}]} {
    %c0 = arith.constant 0 : index
    %c0_0 = arith.constant 0 : index
    %c0_1 = arith.constant 0 : index
    %0 = vector.load %arg2[%c0, %c0_0, %c0_1] : memref<1x32x256xf32, #tpu.memory_space<vmem>>, vector<1x32x256xf32>
    %c0_2 = arith.constant 0 : index
    %c0_3 = arith.constant 0 : index
    %c0_4 = arith.constant 0 : index
    %1 = vector.load %arg3[%c0_2, %c0_3, %c0_4] : memref<1x32x1xf32, #tpu.memory_space<vmem>>, vector<1x32x1xf32>
    %2 = vector.broadcast %1 : vector<1x32x1xf32> to vector<1x32x256xf32>
    %3 = arith.mulf %0, %2 : vector<1x32x256xf32>
    %c0_5 = arith.constant 0 : index
    %c0_6 = arith.constant 0 : index
    %c0_7 = arith.constant 0 : index
    %4 = vector.load %arg4[%c0_5, %c0_6, %c0_7] : memref<1x32x256xf32, #tpu.memory_space<vmem>>, vector<1x32x256xf32>
    tpu.vector_store %arg4[%c0_5, %c0_6, %c0_7], %3 {strides = array<i32>} : memref<1x32x256xf32, #tpu.memory_space<vmem>>, vector<1x32x256xf32>,
    return
  }
  func.func @transform_0(%arg0: i32, %arg1: i32) -> (i32, i32, i32) {
    %c0_i32 = arith.constant 0 : i32
    %c0_i32_0 = arith.constant 0 : i32
    return %arg0, %c0_i32, %arg1 : i32, i32, i32
  }
  func.func @transform_1(%arg0: i32, %arg1: i32) -> (i32, i32, i32) {
    %c0_i32 = arith.constant 0 : i32
    %c0_i32_0 = arith.constant 0 : i32
    %c0_i32_1 = arith.constant 0 : i32
    return %arg0, %c0_i32, %c0_i32_0 : i32, i32, i32
  }
  func.func @transform_2(%arg0: i32, %arg1: i32) -> (i32, i32, i32) {
    %c0_i32 = arith.constant 0 : i32
    %c0_i32_0 = arith.constant 0 : i32
    return %arg0, %c0_i32, %arg1 : i32, i32, i32
  }
}

</mosaic_0001>

<bundles_post_ra>
// kernel: channel_gate.2
= control target key start
LH: loop header
LB: loop body
LE: loop exit
PB: predicated region body
PF: predicated region fallthrough
CT: control target
= control target key end

     0   :  { %v86_v36 = vlaneseq  ;;  %vm97_vm0 = vcmask 130112   ;;  %vm104_vm1 = vcmask 195712   ;;  %vm111_vm2 = vcmask 261312   ;;  %s395_s0 = inlined_call_operand.vmem [shape: f32[2,32,256], index: 0, kind: input, shape index: {}]   ;;  %s396_s1 = inlined_call_operand.vmem [shape: f32[2,32], index: 1, kind: output, shape index: {0}]   ;;  %s397_s2 = inlined_call_operand.vmem [shape: f32[2,32], index: 2, kind: output, shape index: {1}]  }
   0x1   :  { %v18_v0 = vld [vmem:[%s395_s0 + $0x40] sm:$0xff]  ;;  %v19_v1 = vld [vmem:[%s395_s0 + $0x48] sm:$0xff]  ;;  %v20_v5 = vld [vmem:[%s395_s0 + $0x50] sm:$0xff]  ;;  %vm132_vm3 = vcmask 1041409   ;;  %vm135_vm4 = vcmask 254976  }
   0x2   :  { %v10_v2 = vld [vmem:[%s395_s0] sm:$0xff]  ;;  %v38_v3 = vadd.f32 %v19_v1, %v18_v0  ;;  %v11_v4 = vld [vmem:[%s395_s0 + $0x8] sm:$0xff]  ;;  %v21_v6 = vld [vmem:[%s395_s0 + $0x58] sm:$0xff]  ;;  %v62_v15 = vmax.f32 %v18_v0, %v19_v1  ;;  %v87_v39 = vand.u32 127, %v86_v36  ;;  %v89_v43 = vshrl.u32 %v86_v36, 7 }
   0x3   :  { %v26_v7 = vadd.f32 %v11_v4, %v10_v2  ;;  %v12_v8 = vld [vmem:[%s395_s0 + $0x10] sm:$0xff]  ;;  %v13_v9 = vld [vmem:[%s395_s0 + $0x18] sm:$0xff]  ;;  %v41_v10 = vadd.f32 %v21_v6, %v20_v5  ;;  %v50_v13 = vmax.f32 %v10_v2, %v11_v4  ;;  %v65_v14 = vmax.f32 %v20_v5, %v21_v6  ;;  %v22_v16 = vld [vmem:[%s395_s0 + $0x60] sm:$0xff] }
   0x4   :  { %39 = vadd.xlane.f32.xlu1 %v38_v3  ;;  %v29_v11 = vadd.f32 %v13_v9, %v12_v8  ;;  %v53_v12 = vmax.f32 %v12_v8, %v13_v9  ;;  %v23_v17 = vld [vmem:[%s395_s0 + $0x68] sm:$0xff]  ;;  %v14_v18 = vld [vmem:[%s395_s0 + $0x20] sm:$0xff]  ;;  %v24_v24 = vld [vmem:[%s395_s0 + $0x70] sm:$0xff]  ;;  %v92_v40 = vadd.s32 4294967288, %v87_v39  ;;  %v99_v44 = vadd.s32 4294967280, %v87_v39 }
   0x5   :  { %27 = vadd.xlane.f32.xlu0 %v26_v7  ;;  %v15_v19 = vld [vmem:[%s395_s0 + $0x28] sm:$0xff]  ;;  %v44_v20 = vadd.f32 %v23_v17, %v22_v16  ;;  %v68_v22 = vmax.f32 %v22_v16, %v23_v17  ;;  %v25_v25 = vld [vmem:[%s395_s0 + $0x78] sm:$0xff]  ;;  %v16_v26 = vld [vmem:[%s395_s0 + $0x30] sm:$0xff]  ;;  %v106_v48 = vadd.s32 4294967272, %v87_v39  ;;  %v90_v49 = vsub.s32 %v87_v39, %v89_v43 }
   0x6   :  { %v32_v21 = vadd.f32 %v15_v19, %v14_v18  ;;  %v56_v23 = vmax.f32 %v14_v18, %v15_v19  ;;  %v17_v27 = vld [vmem:[%s395_s0 + $0x38] sm:$0xff]  ;;  %v47_v28 = vadd.f32 %v25_v25, %v24_v24  ;;  %v71_v30 = vmax.f32 %v24_v24, %v25_v25 }
   0x7   :  { %v35_v29 = vadd.f32 %v17_v27, %v16_v26  ;;  %v59_v31 = vmax.f32 %v16_v26, %v17_v27  ;;  %v95_v45 = vsub.s32 %v92_v40, %v89_v43  ;;  %v102_v50 = vsub.s32 %v99_v44, %v89_v43 }
   0x8   :  { %42 = vadd.xlane.f32.xlu1 %v41_v10  ;;  %v109_v55 = vsub.s32 %v106_v48, %v89_v43 }
   0x9   :  { %30 = vadd.xlane.f32.xlu0 %v29_v11 }
   0xc   :  { %54 = vmax.xlane.f32.xlu1 %v53_v12 }
   0xd   :  { %51 = vmax.xlane.f32.xlu0 %v50_v13 }
  0x10   :  { %66 = vmax.xlane.f32.xlu1 %v65_v14 }
  0x11   :  { %63 = vmax.xlane.f32.xlu0 %v62_v15 }
  0x14   :  { %45 = vadd.xlane.f32.xlu1 %v44_v20 }
  0x15   :  { %33 = vadd.xlane.f32.xlu0 %v32_v21 }
  0x18   :  { %69 = vmax.xlane.f32.xlu1 %v68_v22 }
  0x19   :  { %57 = vmax.xlane.f32.xlu0 %v56_v23 }
  0x1c   :  { %48 = vadd.xlane.f32.xlu1 %v47_v28 }
  0x1d   :  { %36 = vadd.xlane.f32.xlu0 %v35_v29 }
  0x20   :  { %72 = vmax.xlane.f32.xlu1 %v71_v30 }
  0x21   :  { %60 = vmax.xlane.f32.xlu0 %v59_v31 }
  0x91   :  { %v40_v32 = vpop.xlane.xlu1 %39 }
  0x92   :  { %v28_v33 = vpop.xlane.xlu0 %27  ;;  %v116_v56 = vrot.slane %v40_v32, %v90_v49 }
  0x93   :  { %v91_v57 = vrot.slane %v28_v33, %v90_v49 }
  0x95   :  { %v43_v34 = vpop.xlane.xlu1 %42 }
  0x96   :  { %v31_v35 = vpop.xlane.xlu0 %30  ;;  %v120_v51 = vrot.slane %v43_v34, %v95_v45 }
  0x97   :  { %v96_v52 = vrot.slane %v31_v35, %v95_v45 }
  0x98   :  { %v121_v60 = vsel %vm97_vm0, %v120_v51, %v116_v56 }
  0x99   :  { %v55_v37 = vpop.xlane.xlu1 %54  ;;  %v98_v61 = vsel %vm97_vm0, %v96_v52, %v91_v57 }
  0x9a   :  { %v52_v38 = vpop.xlane.xlu0 %51  ;;  %v152_v63 = vrot.slane %v55_v37, %v95_v45 }
  0x9b   :  { %v148_v4 = vrot.slane %v52_v38, %v90_v49 }
  0x9d   :  { %v67_v41 = vpop.xlane.xlu1 %66  ;;  %v153_v17 = vsel %vm97_vm0, %v152_v63, %v148_v4 }
  0x9e   :  { %v64_v42 = vpop.xlane.xlu0 %63  ;;  %v171_v0 = vrot.slane %v67_v41, %v95_v45 }
  0x9f   :  { %v167_v1 = vrot.slane %v64_v42, %v90_v49 }
  0xa1   :  { %v46_v46 = vpop.xlane.xlu1 %45  ;;  %v172_v13 = vsel %vm97_vm0, %v171_v0, %v167_v1 }
  0xa2   :  { %v34_v47 = vpop.xlane.xlu0 %33  ;;  %v125_v58 = vrot.slane %v46_v46, %v102_v50 }
  0xa3   :  { %v103_v59 = vrot.slane %v34_v47, %v102_v50 }
  0xa4   :  { %v126_v5 = vsel %vm104_vm1, %v125_v58, %v121_v60 }
  0xa5   :  { %v70_v53 = vpop.xlane.xlu1 %69  ;;  %v105_v8 = vsel %vm104_vm1, %v103_v59, %v98_v61 }
  0xa6   :  { %v58_v54 = vpop.xlane.xlu0 %57  ;;  %v176_v6 = vrot.slane %v70_v53, %v102_v50 }
  0xa7   :  { %v157_v9 = vrot.slane %v58_v54, %v102_v50 }
  0xa8   :  { %v177_v18 = vsel %vm104_vm1, %v176_v6, %v172_v13 }
  0xa9   :  { %v49_v62 = vpop.xlane.xlu1 %48  ;;  %v158_v20 = vsel %vm104_vm1, %v157_v9, %v153_v17 }
  0xaa   :  { %v130_v2 = vrot.slane %v49_v62, %v109_v55  ;;  %v37_v3 = vpop.xlane.xlu0 %36 }
  0xab   :  { %v110_v7 = vrot.slane %v37_v3, %v109_v55 }
  0xac   :  { %v131_v10 = vsel %vm111_vm2, %v130_v2, %v126_v5 }
  0xad   :  { %v112_v11 = vsel %vm111_vm2, %v110_v7, %v105_v8  ;;  %v73_v12 = vpop.xlane.xlu1 %72 }
  0xae   :  { %v133_v14 = vsel %vm132_vm3, %v131_v10, %v112_v11  ;;  %v181_v15 = vrot.slane %v73_v12, %v109_v55  ;;  %v61_v16 = vpop.xlane.xlu0 %60 }
  0xaf   :  { %136 = vst.msk [vmem:[%s396_s1] sm:$0x3] %vm135_vm4, %v133_v14  ;;  %v162_v19 = vrot.slane %v61_v16, %v109_v55 }
  0xb0   :  { %v182_v21 = vsel %vm111_vm2, %v181_v15, %v177_v18 }
  0xb1   :  { %v163_v22 = vsel %vm111_vm2, %v162_v19, %v158_v20 }
  0xb2   :  { %v183_v23 = vsel %vm132_vm3, %v182_v21, %v163_v22 }
  0xb3   :  { %185 = vst.msk [vmem:[%s397_s2] sm:$0x3] %vm135_vm4, %v183_v23 }

// kernel: channel_gate.3
= control target key start
LH: loop header
LB: loop body
LE: loop exit
PB: predicated region body
PF: predicated region fallthrough
CT: control target
= control target key end

     0   :  { %s433_s9 = smov 0   ;;  %s435_s10 = smov 0   ;;  %s469_s0 = inlined_call_operand.vmem [shape: f32[2,32,256], index: 0, kind: input, shape index: {}]   ;;  %s470_s1 = inlined_call_operand.vmem [shape: f32[2,32,1], index: 1, kind: input, shape index: {}]   ;;  %s471_s2 = inlined_call_operand.vmem [shape: f32[2,32,256], index: 2, kind: output, shape index: {}]  }
   0x1   :  { %s437_s11 = smov 0  }
   0x2 LB: > { %s24_s12 = sadd.s32 1, %s411_s10  ;;  %p354_p0 = scmp.ge.s32.totalorder %s415_s11, 1  ;;  %s415_s11 = sphi %s437_s11, %s12_s11   ;;  %s411_s10 = sphi %s435_s10, %s473_s10   ;;  %s407_s9 = sphi %s433_s9, %s472_s9  }
   0x3   : > { %p26_p1 = scmp.ge.s32.totalorder %s24_s12, 2  ;;  %p143_p2 = scmp.lt.s32.totalorder %s415_s11, 3 }
   0x5   : > { %s475_s12 = smov (%p26_p1, %s24_s12), 0  ;;  %p144_p3 = pnand %p354_p0, %p143_p2 }
   0x6   : > { %p179_p4 = scmp.lt.s32.totalorder (!%p144_p3), %s407_s9, 1  ;;  %v417_v0 = vmov (!%p144_p3), 0  }
   0x7   : > { %147 = sbr.rel (%p144_p3) target bundleno = 154 (0x9a), region = 28  ;;  %392 = vset.pattern.permute.xlu1 (!%p144_p3), %v417_v0  ;;  %391 = vset.pattern.permute.xlu0 (!%p144_p3), %v417_v0 }
   0xe   : > { %s477_s9 = smov (!%p179_p4, %s407_s9), 1 }
   0xf   : > { %s364_s13 = sshll.u32 %s477_s9, 5  ;;  %s363_s17 = sshll.u32 %s477_s9, 6 }
  0x10   : > { %s192_s16 = scalar_lea.vmem %s470_s1, %s364_s13  ;;  %s186_s20 = scalar_lea.vmem %s469_s0, %s363_s17 }
  0x11   : > { %v213_v1 = vld [vmem:[%s192_s16 + $0x10] sm:$0xff]  ;;  %v211_v2 = vld [vmem:[%s192_s16] sm:$0xff]  ;;  %v214_v3 = vld [vmem:[%s192_s16 + $0x18] sm:$0xff]  ;;  %s201_s23 = scalar_lea.vmem %s471_s2, %s363_s17 }
  0x12   : > { %227 = vperm.xlu1 %392, %v213_v1   ;;  %217 = vperm.xlu0 %391, %v211_v2   ;;  %v212_v4 = vld [vmem:[%s192_s16 + $0x8] sm:$0xff]  ;;  %v207_v5 = vld [vmem:[%s186_s20 + $0x20] sm:$0xff]  ;;  %v209_v15 = vld [vmem:[%s186_s20 + $0x30] sm:$0xff] }
  0x13   : > { %v208_v6 = vld [vmem:[%s186_s20 + $0x28] sm:$0xff]  ;;  %v203_v7 = vld [vmem:[%s186_s20] sm:$0xff]  ;;  %v210_v16 = vld [vmem:[%s186_s20 + $0x38] sm:$0xff] }
  0x14   : > { %v204_v8 = vld [vmem:[%s186_s20 + $0x8] sm:$0xff]  ;;  %v205_v17 = vld [vmem:[%s186_s20 + $0x10] sm:$0xff]  ;;  %v206_v18 = vld [vmem:[%s186_s20 + $0x18] sm:$0xff] }
  0x16   : > { %232 = vperm.xlu1 %392, %v214_v3   ;;  %222 = vperm.xlu0 %391, %v212_v4  }
  0x91   : > { %v228_v9 = vpop.permute.xlu1 %227  ;;  %v218_v10 = vpop.permute.xlu0 %217 }
  0x92   : > { %v239_v11 = vmul.f32 %v228_v9, %v207_v5  ;;  %v240_v12 = vmul.f32 %v228_v9, %v208_v6  ;;  %v235_v13 = vmul.f32 %v218_v10, %v203_v7  ;;  %v236_v14 = vmul.f32 %v218_v10, %v204_v8 }
  0x94   : > { %247 = vst [vmem:[%s201_s23 + $0x20] sm:$0xff] %v239_v11  ;;  %248 = vst [vmem:[%s201_s23 + $0x28] sm:$0xff] %v240_v12 }
  0x95   : > { %243 = vst [vmem:[%s201_s23] sm:$0xff] %v235_v13  ;;  %244 = vst [vmem:[%s201_s23 + $0x8] sm:$0xff] %v236_v14  ;;  %v233_v19 = vpop.permute.xlu1 %232  ;;  %v223_v20 = vpop.permute.xlu0 %222 }
  0x96   : > { %v241_v21 = vmul.f32 %v233_v19, %v209_v15  ;;  %v242_v22 = vmul.f32 %v233_v19, %v210_v16  ;;  %v237_v23 = vmul.f32 %v223_v20, %v205_v17  ;;  %v238_v24 = vmul.f32 %v223_v20, %v206_v18 }
  0x98   : > { %249 = vst [vmem:[%s201_s23 + $0x30] sm:$0xff] %v241_v21  ;;  %250 = vst [vmem:[%s201_s23 + $0x38] sm:$0xff] %v242_v22 }
  0x99   : > { %245 = vst [vmem:[%s201_s23 + $0x10] sm:$0xff] %v237_v23  ;;  %246 = vst [vmem:[%s201_s23 + $0x18] sm:$0xff] %v238_v24 }
  0x9a PF: > { %s12_s11 = sadd.s32 1, %s415_s11   ;;  %s472_s9 = smov %s411_s10 }
  0x9b   : > { %p9_p5 = scmp.ge.s32.totalorder %s12_s11, 4   ;;  %s473_s10 = smov %s475_s12 }
  0x9d   :  { %11 = sbr.rel (!%p9_p5) target bundleno = 2 (0x2), region = 61 }

</bundles_post_ra>
